<compile_context>
chip_gen: v5e
topology: v5e:2x2
jax: 0.10.0
libtpu: 0.0.40
codegen_flags: <defaults>
</compile_context>

<pallas_src>
import jax
import jax.numpy as jnp
from jax.experimental import pallas as pl
from jax.experimental.pallas import tpu as pltpu

TEMP = 2.0 / 3.0
GAMMA = -0.1
ZETA = 1.1
INV_TEMP = 1.0 / TEMP        # 1.5
SCALE = ZETA - GAMMA         # 1.2


# ----------------------------- kernels --------------------------------------


def _train_kernel(loc_ref, u_ref, out_ref):
    u = u_ref[...]
    logits = (jnp.log(u) - jnp.log(1.0 - u) + loc_ref[...]) * INV_TEMP
    # 1.2*sigmoid(x) - 0.1 == 0.6*tanh(0.5*x) + 0.5  (single EUP transcendental)
    s = 0.6 * jnp.tanh(0.5 * logits) + 0.5
    # hard_sigmoid == clip to [0, 1]
    out_ref[...] = jnp.minimum(jnp.maximum(s, 0.0), 1.0).astype(out_ref.dtype)


def _eval_kernel(loc_ref, out_ref):
    # torch.heaviside(loc, ones_like(loc)): 0 if loc<0, 1 if loc>=0.
    out_ref[...] = jnp.where(loc_ref[...] < 0.0, 0.0, 1.0).astype(out_ref.dtype)


# ----------------------------- tiling helpers --------------------------------


def _vmem_budget_and_limit():
    """Generation-aware pipeline-buffer budget + scoped-VMEM limit."""
    try:
        info = pltpu.get_tpu_info()
        cap = int(getattr(info, "vmem_capacity_bytes", 64 << 20))
    except Exception:  # no TPU visible (e.g. interpret mode) -> conservative
        cap = 64 << 20
    budget = max(8 << 20, min(cap * 3 // 8, 48 << 20))   # v7x ~24M, v5e/v6e ~48M
    limit = max(budget + (8 << 20), min(cap * 3 // 4, 96 << 20))
    return budget, limit


def _choose_tiles(rows, cols, elem_bytes, budget):
    """Pick (tile_rows, tile_cols): double-buffered footprint <= budget."""
    tile_cols = cols
    # Lane-axis fallback: one 8-row stripe would already exceed the budget
    # (extremely wide dim_out). Only possible when cols is lane-aligned.
    if cols % 128 == 0 and 2 * 8 * cols * elem_bytes > budget:
        tile_cols = max(128, (budget // (2 * 8 * elem_bytes)) // 128 * 128)
        tile_cols = min(tile_cols, cols)

    budget_rows = budget // max(1, 2 * tile_cols * elem_bytes)
    tile_rows = min(rows, max(8, (budget_rows // 8) * 8))

    # Guarantee >= 2 grid steps so both v7x TensorCores get work
    # (harmless on single-TC v5e/v6e).
    if rows > 8 and pl.cdiv(rows, tile_rows) * pl.cdiv(cols, tile_cols) == 1:
        tile_rows = min(rows, ((pl.cdiv(rows, 2) + 7) // 8) * 8)
    return tile_rows, tile_cols


# ----------------------------- wrapper ---------------------------------------


def binary_weight_forward(loc, u=None, *, training=True, seed=0,
                          out_dtype=jnp.float32):
    """Pallas implementation of BinaryWeight.forward().

    loc: (dim_in, dim_out) float32 parameter.
    u:   optional (dim_in, dim_out) float32 uniform(0,1) samples; if omitted in
         training mode, they are drawn from jax.random.PRNGKey(seed)
         (tile-invariant, deterministic per seed).
    out_dtype: gate dtype (use bfloat16 if the consumer matmul is bf16 — halves
         the store traffic of this HBM-bound kernel).
    """
    dim_in, dim_out = loc.shape
    total = dim_in * dim_out

    if training and u is None:
        # TODO(synk): on real TPU hardware pltpu.prng_seed/prng_random_bits
        # in-kernel would remove this HBM input stream, but those primitives
        # have no CPU/interpret lowering, so noise is generated host-side.
        key = jax.random.PRNGKey(seed)
        u = jax.random.uniform(key, loc.shape, dtype=jnp.float32,
                               minval=1e-6, maxval=1.0 - 1e-6)
    if training:
        assert u.shape == loc.shape

    # Lane-dense slab: present a last dim that's a multiple of 128 so stores
    # are unmasked vst (purely elementwise op -> reshape is free).
    rows, cols = dim_in, dim_out
    reshaped = False
    if dim_out % 128 != 0:
        for w in (2048, 1024, 512, 256, 128):
            if total % w == 0:
                rows, cols = total // w, w
                reshaped = True
                break
    loc2 = loc.reshape(rows, cols) if reshaped else loc
    u2 = u.reshape(rows, cols) if (reshaped and u is not None) else u

    out_bytes = jnp.dtype(out_dtype).itemsize
    elem_bytes = 4 + out_bytes + (4 if training else 0)
    budget, vmem_limit = _vmem_budget_and_limit()
    tile_r, tile_c = _choose_tiles(rows, cols, elem_bytes, budget)
    grid = (pl.cdiv(rows, tile_r), pl.cdiv(cols, tile_c))

    cparams = pltpu.CompilerParams(
        dimension_semantics=("parallel", "parallel"),
        vmem_limit_bytes=vmem_limit,
    )
    spec = pl.BlockSpec((tile_r, tile_c), lambda i, j: (i, j))
    out_shape = jax.ShapeDtypeStruct((rows, cols), out_dtype)

    if training:
        cost = pl.CostEstimate(flops=8 * total, transcendentals=3 * total,
                               bytes_accessed=total * elem_bytes)
        out = pl.pallas_call(
            _train_kernel,
            out_shape=out_shape,
            grid_spec=pltpu.PrefetchScalarGridSpec(
                num_scalar_prefetch=0, grid=grid,
                in_specs=[spec, spec], out_specs=spec),
            compiler_params=cparams,
            cost_estimate=cost,
        )(loc2, u2)
    else:
        cost = pl.CostEstimate(flops=2 * total, transcendentals=0,
                               bytes_accessed=total * elem_bytes)
        out = pl.pallas_call(
            _eval_kernel,
            out_shape=out_shape,
            grid_spec=pltpu.PrefetchScalarGridSpec(
                num_scalar_prefetch=0, grid=grid,
                in_specs=[spec], out_specs=spec),
            compiler_params=cparams,
            cost_estimate=cost,
        )(loc2)

    return out.reshape(dim_in, dim_out) if reshaped else out


# ----------------------------- reference & test ------------------------------


def _reference_forward(loc, u=None, training=True):
    if training:
        s = jax.nn.sigmoid((jnp.log(u) - jnp.log(1.0 - u) + loc) / TEMP)
        s = s * (ZETA - GAMMA) + GAMMA
        return jnp.clip(s, 0.0, 1.0)
    return jnp.where(loc < 0.0, 0.0, 1.0)


def _make_loc(key, dim_in, dim_out):
    # xavier_uniform_: U(-b, b), b = sqrt(6 / (fan_in + fan_out))
    bound = jnp.sqrt(6.0 / (dim_in + dim_out))
    loc = jax.random.uniform(key, (dim_in, dim_out), dtype=jnp.float32,
                             minval=-bound, maxval=bound)
    return loc.at[0, 0].set(0.0)  # exercise heaviside(0) -> 1


if __name__ == "__main__":
    key = jax.random.PRNGKey(0)
    k1, k2, k3, k4 = jax.random.split(key, 4)

    # --- shape 1: lane-aligned (32, 128) -------------------------------------
    dim_in, dim_out = 32, 128
    loc = _make_loc(k1, dim_in, dim_out)
    u = jax.random.uniform(k2, (dim_in, dim_out), dtype=jnp.float32,
                           minval=1e-6, maxval=1.0 - 1e-6)

    # 1) training with caller-provided u: compare to reference
    out_u = jax.block_until_ready(binary_weight_forward(loc, u, training=True))
    ref_u = _reference_forward(loc, u, training=True)
    assert out_u.shape == (dim_in, dim_out) and out_u.dtype == jnp.float32
    assert jnp.allclose(out_u, ref_u, atol=2e-5, rtol=2e-5)

    # 2) training with wrapper-generated noise: deterministic per seed, in [0,1]
    out_a = jax.block_until_ready(binary_weight_forward(loc, training=True, seed=123))
    out_b = jax.block_until_ready(binary_weight_forward(loc, training=True, seed=123))
    assert jnp.array_equal(out_a, out_b)
    assert bool(jnp.all(out_a >= 0.0)) and bool(jnp.all(out_a <= 1.0))
    assert bool(jnp.all(jnp.isfinite(out_a)))

    # 3) eval path (heaviside; loc == 0 must map to 1)
    out_e = jax.block_until_ready(binary_weight_forward(loc, training=False))
    ref_e = _reference_forward(loc, training=False)
    assert jnp.array_equal(out_e, ref_e)
    assert float(out_e[0, 0]) == 1.0

    # 4) bf16 gate output (HBM-bound: halves store traffic) — range check only
    out_bf = jax.block_until_ready(
        binary_weight_forward(loc, training=True, seed=7, out_dtype=jnp.bfloat16))
    assert out_bf.dtype == jnp.bfloat16
    assert bool(jnp.all(out_bf.astype(jnp.float32) >= 0.0))
    assert bool(jnp.all(out_bf.astype(jnp.float32) <= 1.0))

    # --- shape 2: non-lane-aligned (24, 80) exercises the lane-dense reshape ---
    dim_in2, dim_out2 = 24, 80
    loc2 = _make_loc(k3, dim_in2, dim_out2)
    u2 = jax.random.uniform(k4, (dim_in2, dim_out2), dtype=jnp.float32,
                            minval=1e-6, maxval=1.0 - 1e-6)
    out_u2 = jax.block_until_ready(binary_weight_forward(loc2, u2, training=True))
    assert out_u2.shape == (dim_in2, dim_out2)
    assert jnp.allclose(out_u2, _reference_forward(loc2, u2, training=True),
                        atol=2e-5, rtol=2e-5)
    out_e2 = jax.block_until_ready(binary_weight_forward(loc2, training=False))
    assert jnp.array_equal(out_e2, _reference_forward(loc2, training=False))

    print("KERNEL_OK")
</pallas_src>

<mosaic_0001>
module attributes {stable_mosaic.version = 11 : i64} {
  func.func @_train_kernel(%arg0: i32, %arg1: i32, %arg2: memref<16x128xf32, #tpu.memory_space<vmem>>, %arg3: memref<16x128xf32, #tpu.memory_space<vmem>>, %arg4: memref<16x128xf32, #tpu.memory_space<vmem>>) attributes {dimension_semantics = [#tpu.dimension_semantics<parallel>, #tpu.dimension_semantics<parallel>], iteration_bounds = array<i64: 2, 1>, scalar_prefetch = 0 : i64, scratch_operands = 0 : i64, tpu.core_type = #tpu.core_type<tc>, window_params = [{transform_indices = @transform_0, window_bounds = array<i64: 16, 128>}, {transform_indices = @transform_1, window_bounds = array<i64: 16, 128>}, {transform_indices = @transform_2, window_bounds = array<i64: 16, 128>}]} {
    %c0 = arith.constant 0 : index
    %c0_0 = arith.constant 0 : index
    %0 = vector.load %arg3[%c0, %c0_0] : memref<16x128xf32, #tpu.memory_space<vmem>>, vector<16x128xf32>
    %1 = math.log %0 : vector<16x128xf32>
    %cst = arith.constant 1.000000e+00 : f32
    %2 = vector.broadcast %cst : f32 to vector<16x128xf32>
    %3 = arith.subf %2, %0 : vector<16x128xf32>
    %4 = math.log %3 : vector<16x128xf32>
    %5 = arith.subf %1, %4 : vector<16x128xf32>
    %c0_1 = arith.constant 0 : index
    %c0_2 = arith.constant 0 : index
    %6 = vector.load %arg2[%c0_1, %c0_2] : memref<16x128xf32, #tpu.memory_space<vmem>>, vector<16x128xf32>
    %7 = arith.addf %5, %6 : vector<16x128xf32>
    %cst_3 = arith.constant 1.500000e+00 : f32
    %8 = vector.broadcast %cst_3 : f32 to vector<16x128xf32>
    %9 = arith.mulf %7, %8 : vector<16x128xf32>
    %cst_4 = arith.constant 5.000000e-01 : f32
    %10 = vector.broadcast %cst_4 : f32 to vector<16x128xf32>
    %11 = arith.mulf %10, %9 : vector<16x128xf32>
    %12 = math.tanh %11 : vector<16x128xf32>
    %cst_5 = arith.constant 6.000000e-01 : f32
    %13 = vector.broadcast %cst_5 : f32 to vector<16x128xf32>
    %14 = arith.mulf %13, %12 : vector<16x128xf32>
    %cst_6 = arith.constant 5.000000e-01 : f32
    %15 = vector.broadcast %cst_6 : f32 to vector<16x128xf32>
    %16 = arith.addf %14, %15 : vector<16x128xf32>
    %cst_7 = arith.constant 0.000000e+00 : f32
    %17 = vector.broadcast %cst_7 : f32 to vector<16x128xf32>
    %18 = arith.maximumf %16, %17 : vector<16x128xf32>
    %cst_8 = arith.constant 1.000000e+00 : f32
    %19 = vector.broadcast %cst_8 : f32 to vector<16x128xf32>
    %20 = arith.minimumf %18, %19 : vector<16x128xf32>
    %c0_9 = arith.constant 0 : index
    %c0_10 = arith.constant 0 : index
    %21 = vector.load %arg4[%c0_9, %c0_10] : memref<16x128xf32, #tpu.memory_space<vmem>>, vector<16x128xf32>
    tpu.vector_store %arg4[%c0_9, %c0_10], %20 {strides = array<i32>} : memref<16x128xf32, #tpu.memory_space<vmem>>, vector<16x128xf32>,
    return
  }
  func.func @transform_0(%arg0: i32, %arg1: i32) -> (i32, i32) {
    %c0_i32 = arith.constant 0 : i32
    return %arg0, %arg1 : i32, i32
  }
  func.func @transform_1(%arg0: i32, %arg1: i32) -> (i32, i32) {
    %c0_i32 = arith.constant 0 : i32
    return %arg0, %arg1 : i32, i32
  }
  func.func @transform_2(%arg0: i32, %arg1: i32) -> (i32, i32) {
    %c0_i32 = arith.constant 0 : i32
    return %arg0, %arg1 : i32, i32
  }
}

</mosaic_0001>

<bundles_post_ra>
// kernel: tpu_custom_call.1
= control target key start
LH: loop header
LB: loop body
LE: loop exit
PB: predicated region body
PF: predicated region fallthrough
CT: control target
= control target key end

     0   :  { %7 = vsyncpa [#allocation3], 0  ;;  %s808_s0 = inlined_call_operand.hbm [shape: f32[32,128], index: 0, kind: input, shape index: {}]   ;;  %s809_s1 = inlined_call_operand.hbm [shape: f32[32,128], index: 1, kind: input, shape index: {}]   ;;  %s810_s2 = inlined_call_operand.hbm [shape: f32[32,128], index: 2, kind: output, shape index: {}]  }
   0x1   :  { %9 = vsyncpa [#allocation3 + $0x1], 0 }
   0x2   :  { %10 = vsyncpa [#allocation6], 0 }
   0x3   :  { %12 = vsyncpa [#allocation6 + $0x1], 0 }
   0x4   :  { %13 = vsyncpa [#allocation4], 0 }
   0x5   :  { %15 = vsyncpa [#allocation4 + $0x1], 0  ;;  %s662_s9 = smov 0   ;;  %s664_s10 = smov 0  }
   0x6   :  { %s666_s11 = smov 0   ;;  %s668_s12 = smov 0  }
   0x7   :  { %s670_s13 = smov 0   ;;  %s672_s14 = smov 0  }
   0x8 LB: > { %s390_s15 = sadd.s32 4294967295, %s641_s14   ;;  %s391_s16 = sadd.s32 4294967294, %s641_s14   ;;  %s641_s14 = sphi %s672_s14, %s21_s14   ;;  %s637_s13 = sphi %s670_s13, %s820_s13   ;;  %s633_s12 = sphi %s668_s12, %s819_s12   ;;  %s629_s11 = sphi %s666_s11, %s818_s11   ;;  %s625_s10 = sphi %s664_s10, %s817_s10   ;;  %s621_s9 = sphi %s662_s9, %s816_s9  }
   0x9   : > { %s33_s17 = sadd.s32 1, %s637_s13  ;;  %s42_s18 = sadd.s32 1, %s629_s11 }
   0xa   : > { %p35_p0 = scmp.ge.s32.totalorder %s33_s17, 2  ;;  %p49_p1 = scmp.ne.s32.totalorder %s629_s11, %s625_s10 }
   0xb   : > { %p50_p2 = scmp.eq.s32.totalorder %s641_s14, 0  ;;  %p55_p3 = scmp.ne.s32.totalorder %s625_s10, %s621_s9 }
   0xc   : > { %s822_s17 = smov (%p35_p0, %s33_s17), 0  ;;  %p56_p5 = scmp.eq.s32.totalorder %s390_s15, 0 }
   0xd   : > { %p703_p4 = por %p50_p2, %p49_p1  ;;  %s37_s20 = ssub.s32 %s637_s13, %s822_s17 }
   0xe   : > { %p109_p6 = scmp.eq.s32.totalorder %s390_s15, 1  ;;  %p40_p7 = scmp.eq.s32.totalorder %s37_s20, 0 }
   0xf   : > { %p709_p8 = por %p56_p5, %p55_p3  ;;  %p115_p10 = scmp.eq.s32.totalorder %s391_s16, 1 }
  0x10   : > { %p713_p9 = por %p109_p6, %p49_p1  ;;  %p393_p12 = scmp.ge.s32.totalorder %s641_s14, 2 }
  0x11   : > { %s718_s23 = scalar_select %p40_p7, %s629_s11, %s42_s18  }
  0x12   : > { %p720_p11 = por %p115_p10, %p55_p3  ;;  %p429_p13 = scmp.lt.s32.totalorder %s641_s14, 2 }
  0x13   : > { %s727_s25 = sand.u32 1, %s629_s11   ;;  %s409_s27 = sshll.u32 %s637_s13, 4 }
  0x14   : > { %s394_s26 = sshll.u32 %s727_s25, 4  ;;  %s145_s30 = scalar_lea.hbm %s808_s0, %s409_s27 }
  0x15   : > { %s139_s3 = scalar_lea.vmem [#allocation2], %s394_s26  ;;  %s146_s5 = sshll.u32 %s145_s30, 4  ;;  %s147_s5 = int_to_ptr.hbm [resolvable:$true] %s146_s5 }
  0x16   : > { %s148_s4 = sshll.u32 %s139_s3, 4  ;;  %p736_p0 = pnand %p429_p13, %p703_p4  ;;  %s149_s4 = int_to_ptr.vmem [resolvable:$true] %s148_s4 }
  0x17   : > { %p400_p1 = scmp.ge.s32.totalorder %s641_s14, 1  ;;  %s136_s7 = scalar_lea.sflag [#allocation3], %s727_s25 }
  0x18   : > { %s643_s8 = smov 128   ;;  %s644_s15 = smov 8  }
  0x19   : > { %421 = dma.hbm_to_vmem [thread:$0]  (!%p736_p0), %s147_s5, 256, %s149_s4, %s136_s7, %s643_s8, %s643_s8, %s644_s15  }
  0x1a   : > { %p179_p2 = scmp.lt.s32.totalorder %s641_s14, 3  ;;  %s168_s20 = scalar_lea.hbm %s809_s1, %s409_s27 }
  0x1b   : > { %s169_s28 = sshll.u32 %s168_s20, 4  ;;  %s162_s19 = scalar_lea.vmem [#allocation5], %s394_s26  ;;  %s170_s28 = int_to_ptr.hbm [resolvable:$true] %s169_s28 }
  0x1c   : > { %p180_p3 = pnand %p400_p1, %p179_p2  ;;  %s171_s29 = sshll.u32 %s162_s19, 4  ;;  %s172_s29 = int_to_ptr.vmem [resolvable:$true] %s171_s29 }
  0x1d   : > { %s159_s30 = scalar_lea.sflag [#allocation6], %s727_s25  ;;  %s752_s3 = sand.u32 (!%p180_p3), 1, %s625_s10  }
  0x1e   : > { %424 = dma.hbm_to_vmem [thread:$0]  (!%p736_p0), %s170_s28, 256, %s172_s29, %s159_s30, %s643_s8, %s643_s8, %s644_s15  }
  0x1f   : > { %183 = sbr.rel (%p180_p3) target bundleno = 79 (0x4f), region = 28  ;;  %s755_s4 = sshll.u32 (!%p180_p3), %s752_s3, 4 }
  0x20   : > { %s186_s27 = scalar_lea.sflag (!%p180_p3), [#allocation3], %s752_s3  ;;  %s189_s5 = scalar_lea.vmem (!%p180_p3), [#allocation2], %s755_s4 }
  0x24   : > { %608 = dma.done.wait (%p709_p8), %s186_s27, 256  }
  0x25   : > { %610 = vsyncadd (%p709_p8), %s186_s27, 4294967040  ;;  %s196_s25 = scalar_lea.sflag [#allocation6], %s752_s3  ;;  %s199_s26 = scalar_lea.vmem [#allocation5], %s755_s4 }
  0x26   : > { %612 = dma.done.wait (%p709_p8), %s196_s25, 256  }
  0x27   : > { %614 = vsyncadd (%p709_p8), %s196_s25, 4294967040  ;;  %v229_v0 = vld [vmem:[%s199_s26] sm:$0xff]  ;;  %v230_v1 = vld [vmem:[%s199_s26 + $0x8] sm:$0xff]  ;;  %s411_s21 = sshll.u32 %s633_s12, 4  ;;  %s225_s15 = scalar_lea.vmem [#allocation7], %s755_s4 }
  0x28   : > { %483 = vlog2.f32 %v229_v0  ;;  %v235_v2 = vsub.f32 1.0, %v229_v0  ;;  %v236_v3 = vsub.f32 1.0, %v230_v1  ;;  %v243_v11 = vld [vmem:[%s189_s5] sm:$0xff]  ;;  %v244_v14 = vld [vmem:[%s189_s5 + $0x8] sm:$0xff]  ;;  %s276_s8 = scalar_lea.hbm %s810_s2, %s411_s21  ;;  %s277_s16 = sshll.u32 %s225_s15, 4  ;;  %s278_s16 = int_to_ptr.vmem [resolvable:$true] %s277_s16 }
  0x29   : > { %485 = vlog2.f32 %v230_v1  ;;  %s279_s18 = sshll.u32 %s276_s8, 4  ;;  %s264_s12 = scalar_lea.sflag [#allocation4], %s752_s3  ;;  %s280_s18 = int_to_ptr.hbm [resolvable:$true] %s279_s18 }
  0x2a   : > { %487 = vlog2.f32 %v235_v2  ;;  %s569_s20 = sshra.s32 %s280_s18, 4  ;;  %s575_s30 = scalar_lea.hbm %s810_s2, 32  ;;  %s570_s20 = int_to_ptr.hbm [resolvable:$true] %s569_s20 }
  0x2b   : > { %489 = vlog2.f32 %v236_v3  ;;  %s571_s28 = scalar_lea.hbm %s570_s20, 16  ;;  %p576_p7 = scmp.lt.s32.totalorder %s570_s20, %s810_s2 }
  0x2c   : > { %p572_p4 = scmp.ne.s32.totalorder %s570_s20, %s571_s28  ;;  %p577_p8 = scmp.lt.s32.totalorder %s575_s30, %s571_s28 }
  0x2e   : > { %v484_v4 = vpop.eup %483  ;;  %p573_p5 = pnand %p572_p4, %p713_p9  ;;  %p578_p10 = por %p577_p8, %p576_p7 }
  0x2f   : > { %v486_v5 = vpop.eup %485  ;;  %v232_v6 = vmul.f32 0.6931472, %v484_v4 }
  0x30   : > { %v488_v7 = vpop.eup %487  ;;  %v234_v8 = vmul.f32 0.6931472, %v486_v5  ;;  %p574_p6 = pneg %p573_p5 }
  0x31   : > { %v490_v9 = vpop.eup %489  ;;  %v238_v10 = vmul.f32 0.6931472, %v488_v7 }
  0x32   : > { %v240_v12 = vmul.f32 0.6931472, %v490_v9  ;;  %p579_p13 = pnand %p578_p10, %p574_p6 }
  0x33   : > { %v241_v13 = vsub.f32 %v232_v6, %v238_v10 }
  0x34   : > { %v242_v15 = vsub.f32 %v234_v8, %v240_v12 }
  0x35   : > { %v245_v16 = vadd.f32 %v243_v11, %v241_v13 }
  0x36   : > { %v246_v17 = vadd.f32 %v244_v14, %v242_v15 }
  0x37   : > { %v247_v18 = vmul.f32 1.5, %v245_v16 }
  0x38   : > { %v248_v19 = vmul.f32 1.5, %v246_v17 }
  0x39   : > { %v249_v20 = vmul.f32 0.5, %v247_v18 }
  0x3a   : > { %v250_v21 = vmul.f32 0.5, %v248_v19 }
  0x3b   : > { %491 = vtanh.f32 %v249_v20 }
  0x3c   : > { %493 = vtanh.f32 %v250_v21 }
  0x41   : > { %v492_v22 = vpop.eup %491 }
  0x42   : > { %v494_v23 = vpop.eup %493  ;;  %v253_v24 = vmul.f32 0.6, %v492_v22 }
  0x43   : > { %v254_v25 = vmul.f32 0.6, %v494_v23 }
  0x44   : > { %v255_v26 = vadd.f32 0.5, %v253_v24 }
  0x45   : > { %v256_v27 = vadd.f32 0.5, %v254_v25 }
  0x46   : > { %v257_v28 = vmax.f32 %v255_v26, 0.0 }
  0x47   : > { %v258_v29 = vmax.f32 %v256_v27, 0.0 }
  0x48   : > { %v259_v30 = vmin.f32 %v257_v28, 1.0 }
  0x49   : > { %v260_v31 = vmin.f32 %v258_v29, 1.0 }
  0x4a   : > { %261 = vst [vmem:[%s225_s15] sm:$0xff] %v259_v30 }
  0x4b   : > { %262 = vst [vmem:[%s225_s15 + $0x8] sm:$0xff] %v260_v31 }
  0x4c   : > { %582 = shalt.err (!%p579_p13)
}
  0x4d   : > { %s645_s3 = smov 128   ;;  %s646_s5 = smov 8  }
  0x4e   : > { %416 = dma.vmem_to_hbm [thread:$0]  (%p713_p9), %s278_s16, 256, %s280_s18, %s264_s12, %s645_s3, %s645_s3, %s646_s5  }
  0x4f PF: > { %s294_s25 = sand.u32 1, %s621_s9   ;;  %p426_p0 = pnand %p393_p12, %p720_p11 }
  0x50   : > { %s295_s26 = scalar_lea.sflag [#allocation4], %s294_s25 }
  0x51   : > { %p427_p1 = pneg %p426_p0 }
  0x53   : > { %616 = dma.done.wait (%p427_p1), %s295_s26, 256  }
  0x54   : > { %618 = vsyncadd (%p427_p1), %s295_s26, 4294967040  ;;  %s21_s14 = sadd.s32 1, %s641_s14   ;;  %s816_s9 = smov %s625_s10 }
  0x55   : > { %p18_p2 = scmp.ge.s32.totalorder %s21_s14, 4   ;;  %s817_s10 = smov %s629_s11 }
  0x56   : > { %s818_s11 = smov %s718_s23  ;;  %s819_s12 = smov %s637_s13 }
  0x57   : > { %s820_s13 = smov %s822_s17  ;;  %20 = sbr.rel (!%p18_p2) target bundleno = 8 (0x8), region = 86 }
  0x5c   :  { %301 = vsyncpa [#allocation3], 1 }
  0x5d   :  { %303 = vsyncpa [#allocation3 + $0x1], 1 }
  0x5e   :  { %304 = vsyncpa [#allocation6], 1 }
  0x5f   :  { %306 = vsyncpa [#allocation6 + $0x1], 1 }
  0x60   :  { %307 = vsyncpa [#allocation4], 1 }
  0x61   :  { %309 = vsyncpa [#allocation4 + $0x1], 1 }

</bundles_post_ra>
